<compile_context>
chip_gen: v7x
topology: tpu7x:2x2x1
jax: 0.10.0
libtpu: 0.0.40
codegen_flags: <defaults>
</compile_context>

<pallas_src>
import jax
import jax.numpy as jnp
from jax.experimental import pallas as pl
from jax.experimental.pallas import tpu as pltpu

LANE = 128      # lane width (last dim)
SUBLANE = 8     # f32 sublane granularity (second-to-last dim)


def _round_up(x, m):
    return (x + m - 1) // m * m


def make_actor_kernel(num_layers):
    """Fused MLP kernel: relu on hidden layers, tanh on the output layer."""

    def kernel(x_ref, w_ref, b_ref, o_ref):
        h = x_ref[...]                       # (TB, P) activation tile
        b = b_ref[...]                       # (L, P) biases, one small load
        for l in range(num_layers):          # static unroll (L known at trace time)
            z = jnp.dot(h, w_ref[l], preferred_element_type=jnp.float32)  # MXU
            z = z + b[l:l + 1, :]            # (1, P) bias broadcast over batch tile
            if l == num_layers - 1:
                h = jnp.tanh(z)              # EUP
            else:
                h = jnp.maximum(z, 0.0)      # VPU
        o_ref[...] = h.astype(o_ref.dtype)   # lane-dense (TB, P) store

    return kernel


def pack_params(weights, biases):
    """Zero-pad all layer dims to a common multiple of 128 and stack the layers.

    Done once at parameter-prep time.  Returns:
      w_packed: (L, P, P) f32   b_packed: (L, P) f32
    """
    L = len(weights)
    dims = [weights[0].shape[0]] + [w.shape[1] for w in weights]
    P = _round_up(max(dims), LANE)
    w_p = jnp.zeros((L, P, P), jnp.float32)
    b_p = jnp.zeros((L, P), jnp.float32)
    for l in range(L):
        w_p = w_p.at[l, :dims[l], :dims[l + 1]].set(weights[l].astype(jnp.float32))
        b_p = b_p.at[l, :dims[l + 1]].set(biases[l].astype(jnp.float32))
    return w_p, b_p


def actor_forward(state, w_packed, b_packed, action_size, *, tb=128):
    """state: (B, state_size) f32; w_packed/b_packed from pack_params."""
    L, P, _ = w_packed.shape
    B, S = state.shape

    # Batch tile: multiple of 8 (f32 sublane), capped at `tb`.
    TB = min(tb, _round_up(B, SUBLANE))
    Bp = _round_up(B, TB)

    # Pad batch to a tile multiple and the feature dim to the packed width P.
    x = jnp.zeros((Bp, P), jnp.float32).at[:B, :S].set(state.astype(jnp.float32))

    cost = pl.CostEstimate(
        flops=2 * Bp * L * P * P,
        transcendentals=Bp * P,                               # final tanh
        bytes_accessed=4 * (2 * Bp * P + L * P * P + L * P),  # x + out + W + b
    )

    out = pl.pallas_call(
        make_actor_kernel(L),
        out_shape=jax.ShapeDtypeStruct((Bp, P), jnp.float32),
        grid=(Bp // TB,),
        in_specs=[
            pl.BlockSpec((TB, P), lambda i: (i, 0)),        # activation tile (pipelined)
            pl.BlockSpec((L, P, P), lambda i: (0, 0, 0)),   # weights, VMEM-resident
            pl.BlockSpec((L, P), lambda i: (0, 0)),         # biases, VMEM-resident
        ],
        out_specs=pl.BlockSpec((TB, P), lambda i: (i, 0)),  # lane-dense output slab
        compiler_params=pltpu.CompilerParams(
            dimension_semantics=("parallel",)),
        cost_estimate=cost,
    )(x, w_packed, b_packed)

    # Strip batch / action padding outside the kernel.
    return out[:B, :action_size]


def init_params(key, state_size, hidden_layers, action_size):
    """nn.Linear-style U(-1/sqrt(fan_in), 1/sqrt(fan_in)) init, stored as (in, out)."""
    sizes = [state_size] + list(hidden_layers) + [action_size]
    weights, biases = [], []
    for i in range(len(sizes) - 1):
        fan_in, fan_out = sizes[i], sizes[i + 1]
        key, kw, kb = jax.random.split(key, 3)
        bound = 1.0 / jnp.sqrt(jnp.float32(fan_in))
        weights.append(jax.random.uniform(kw, (fan_in, fan_out), jnp.float32, -bound, bound))
        biases.append(jax.random.uniform(kb, (fan_out,), jnp.float32, -bound, bound))
    return weights, biases


def actor_reference(state, weights, biases):
    h = state
    for l in range(len(weights) - 1):
        h = jnp.maximum(h @ weights[l] + biases[l], 0.0)
    return jnp.tanh(h @ weights[-1] + biases[-1])


# TODO(synk): use_batch_norm=True branch (BatchNorm1d between layers) not implemented;
# only the default (no batch norm) forward path is translated.

if __name__ == "__main__":
    # Small shapes consistent with Actor(state_size, action_size, seed, hidden_layers)
    batch = 8
    state_size = 24
    hidden_layers = [32, 32]
    action_size = 4

    key = jax.random.PRNGKey(0)
    key, kp = jax.random.split(key)
    weights, biases = init_params(kp, state_size, hidden_layers, action_size)
    key, kx = jax.random.split(key)
    state = jax.random.normal(kx, (batch, state_size), jnp.float32)

    w_packed, b_packed = pack_params(weights, biases)
    out = actor_forward(state, w_packed, b_packed, action_size)
    out = jax.block_until_ready(out)

    ref = actor_reference(state, weights, biases)
    assert out.shape == (batch, action_size)
    assert jnp.allclose(out, ref, atol=1e-5, rtol=1e-5), "mismatch vs JAX reference"

    print("KERNEL_OK")
</pallas_src>

<mosaic_0001>
module attributes {stable_mosaic.version = 11 : i64} {
  func.func @kernel(%arg0: i32, %arg1: memref<8x128xf32, #tpu.memory_space<vmem>>, %arg2: memref<3x128x128xf32, #tpu.memory_space<vmem>>, %arg3: memref<3x128xf32, #tpu.memory_space<vmem>>, %arg4: memref<8x128xf32, #tpu.memory_space<vmem>>) attributes {dimension_semantics = [#tpu.dimension_semantics<parallel>], iteration_bounds = array<i64: 1>, scalar_prefetch = 0 : i64, scratch_operands = 0 : i64, tpu.core_type = #tpu.core_type<tc>, window_params = [{transform_indices = @transform_0, window_bounds = array<i64: 8, 128>}, {pipeline_mode = #tpu.pipeline_mode<synchronous>, transform_indices = @transform_1, window_bounds = array<i64: 3, 128, 128>}, {pipeline_mode = #tpu.pipeline_mode<synchronous>, transform_indices = @transform_2, window_bounds = array<i64: 3, 128>}, {transform_indices = @transform_3, window_bounds = array<i64: 8, 128>}]} {
    %c0 = arith.constant 0 : index
    %c0_0 = arith.constant 0 : index
    %0 = vector.load %arg1[%c0, %c0_0] : memref<8x128xf32, #tpu.memory_space<vmem>>, vector<8x128xf32>
    %c0_1 = arith.constant 0 : index
    %c0_2 = arith.constant 0 : index
    %1 = vector.load %arg3[%c0_1, %c0_2] : memref<3x128xf32, #tpu.memory_space<vmem>>, vector<3x128xf32>
    %c0_3 = arith.constant 0 : index
    %c0_4 = arith.constant 0 : index
    %c0_5 = arith.constant 0 : index
    %2 = vector.load %arg2[%c0_3, %c0_4, %c0_5] : memref<3x128x128xf32, #tpu.memory_space<vmem>>, vector<1x128x128xf32>
    %3 = vector.shape_cast %2 : vector<1x128x128xf32> to vector<128x128xf32>
    %cst = arith.constant dense<0.000000e+00> : vector<8x128xf32>
    %4 = tpu.matmul %0, %3, %cst {dimension_numbers = #tpu.dot_dimension_numbers<[1], [0], [0], [1], [0, 0, 1, 1], [], []>} : vector<8x128xf32>, vector<128x128xf32>, vector<8x128xf32> -> vector<8x128xf32>
    %5 = vector.extract_strided_slice %1 {offsets = [0, 0], sizes = [1, 128], strides = [1, 1]} : vector<3x128xf32> to vector<1x128xf32>
    %6 = vector.broadcast %5 : vector<1x128xf32> to vector<8x128xf32>
    %7 = arith.addf %4, %6 : vector<8x128xf32>
    %cst_6 = arith.constant 0.000000e+00 : f32
    %8 = vector.broadcast %cst_6 : f32 to vector<8x128xf32>
    %9 = arith.maximumf %7, %8 : vector<8x128xf32>
    %c1 = arith.constant 1 : index
    %c0_7 = arith.constant 0 : index
    %c0_8 = arith.constant 0 : index
    %10 = vector.load %arg2[%c1, %c0_7, %c0_8] : memref<3x128x128xf32, #tpu.memory_space<vmem>>, vector<1x128x128xf32>
    %11 = vector.shape_cast %10 : vector<1x128x128xf32> to vector<128x128xf32>
    %cst_9 = arith.constant dense<0.000000e+00> : vector<8x128xf32>
    %12 = tpu.matmul %9, %11, %cst_9 {dimension_numbers = #tpu.dot_dimension_numbers<[1], [0], [0], [1], [0, 0, 1, 1], [], []>} : vector<8x128xf32>, vector<128x128xf32>, vector<8x128xf32> -> vector<8x128xf32>
    %13 = vector.extract_strided_slice %1 {offsets = [1, 0], sizes = [1, 128], strides = [1, 1]} : vector<3x128xf32> to vector<1x128xf32>
    %14 = vector.broadcast %13 : vector<1x128xf32> to vector<8x128xf32>
    %15 = arith.addf %12, %14 : vector<8x128xf32>
    %cst_10 = arith.constant 0.000000e+00 : f32
    %16 = vector.broadcast %cst_10 : f32 to vector<8x128xf32>
    %17 = arith.maximumf %15, %16 : vector<8x128xf32>
    %c2 = arith.constant 2 : index
    %c0_11 = arith.constant 0 : index
    %c0_12 = arith.constant 0 : index
    %18 = vector.load %arg2[%c2, %c0_11, %c0_12] : memref<3x128x128xf32, #tpu.memory_space<vmem>>, vector<1x128x128xf32>
    %19 = vector.shape_cast %18 : vector<1x128x128xf32> to vector<128x128xf32>
    %cst_13 = arith.constant dense<0.000000e+00> : vector<8x128xf32>
    %20 = tpu.matmul %17, %19, %cst_13 {dimension_numbers = #tpu.dot_dimension_numbers<[1], [0], [0], [1], [0, 0, 1, 1], [], []>} : vector<8x128xf32>, vector<128x128xf32>, vector<8x128xf32> -> vector<8x128xf32>
    %21 = vector.extract_strided_slice %1 {offsets = [2, 0], sizes = [1, 128], strides = [1, 1]} : vector<3x128xf32> to vector<1x128xf32>
    %22 = vector.broadcast %21 : vector<1x128xf32> to vector<8x128xf32>
    %23 = arith.addf %20, %22 : vector<8x128xf32>
    %24 = math.tanh %23 : vector<8x128xf32>
    %c0_14 = arith.constant 0 : index
    %c0_15 = arith.constant 0 : index
    %25 = vector.load %arg4[%c0_14, %c0_15] : memref<8x128xf32, #tpu.memory_space<vmem>>, vector<8x128xf32>
    tpu.vector_store %arg4[%c0_14, %c0_15], %24 {strides = array<i32>} : memref<8x128xf32, #tpu.memory_space<vmem>>, vector<8x128xf32>,
    return
  }
  func.func @transform_0(%arg0: i32) -> (i32, i32) {
    %c0_i32 = arith.constant 0 : i32
    %c0_i32_0 = arith.constant 0 : i32
    return %arg0, %c0_i32 : i32, i32
  }
  func.func @transform_1(%arg0: i32) -> (i32, i32, i32) {
    %c0_i32 = arith.constant 0 : i32
    %c0_i32_0 = arith.constant 0 : i32
    %c0_i32_1 = arith.constant 0 : i32
    %c0_i32_2 = arith.constant 0 : i32
    return %c0_i32, %c0_i32_0, %c0_i32_1 : i32, i32, i32
  }
  func.func @transform_2(%arg0: i32) -> (i32, i32) {
    %c0_i32 = arith.constant 0 : i32
    %c0_i32_0 = arith.constant 0 : i32
    %c0_i32_1 = arith.constant 0 : i32
    return %c0_i32, %c0_i32_0 : i32, i32
  }
  func.func @transform_3(%arg0: i32) -> (i32, i32) {
    %c0_i32 = arith.constant 0 : i32
    %c0_i32_0 = arith.constant 0 : i32
    return %arg0, %c0_i32 : i32, i32
  }
}

</mosaic_0001>

<bundles_post_ra>
// kernel: tpu_custom_call.1
= control target key start
LH: loop header
LB: loop body
LE: loop exit
PB: predicated region body
PF: predicated region fallthrough
CT: control target
= control target key end

     0   :  { %8 = vsyncpa [#allocation3], 0  ;;  %s749_s0 = inlined_call_operand.hbm [shape: f32[8,128], index: 0, kind: input, shape index: {}]   ;;  %s750_s1 = inlined_call_operand.hbm [shape: f32[3,128,128], index: 1, kind: input, shape index: {}]   ;;  %s751_s2 = inlined_call_operand.vmem [shape: f32[3,128], index: 2, kind: input, shape index: {}]   ;;  %s752_s3 = inlined_call_operand.hbm [shape: f32[8,128], index: 3, kind: output, shape index: {}]  }
   0x1   :  { %9 = vsyncpa [#allocation6], 0 }
   0x2   :  { %10 = vsyncpa [#allocation4], 0  ;;  %s645_s12 = smov [#allocation2]   ;;  %s646_s14 = smov [#allocation5]  }
   0x3   :  { %s17_s13 = sshll.u32 %s645_s12, 4  ;;  %s26_s15 = sshll.u32 %s646_s14, 4  ;;  %s18_s13 = int_to_ptr.vmem [resolvable:$true] %s17_s13  ;;  %s673_s15 = int_to_ptr.vmem [resolvable:$true] %s26_s15 }
   0x4   :  { %s573_s18 = scalar_lea.hbm %s749_s0, 128 }
   0x5   :  { %p574_p0 = scmp.ne.s32.totalorder %s749_s0, %s573_s18  ;;  %p577_p1 = scmp.lt.u32.totalorder %s573_s18, %s749_s0 }
   0x7   :  { %p579_p2 = pnand %p577_p1, %p574_p0 }
   0x9   :  { %582 = shalt.err (!%p579_p2)
}
   0xa   :  { %s583_s23 = scalar_lea.vmem %s18_s13, 128  ;;  %p588_p4 = scmp.lt.s32.totalorder %s18_s13, %s18_s13 }
   0xb   :  { %p584_p3 = scmp.ne.s32.totalorder %s18_s13, %s583_s23  ;;  %p589_p5 = scmp.lt.s32.totalorder %s583_s23, %s583_s23 }
   0xd   :  { %p590_p6 = por %p589_p5, %p588_p4 }
   0xf   :  { %p591_p7 = pnand %p590_p6, %p584_p3 }
  0x11   :  { %594 = shalt.err (!%p591_p7)
}
  0x12   :  { %20 = dma.hbm_to_vmem [thread:$0]  %s749_s0, 128, %s18_s13, [#allocation3]  }
  0x13   :  { %s595_s28 = scalar_lea.hbm %s750_s1, 6144 }
  0x14   :  { %p596_p8 = scmp.ne.s32.totalorder %s750_s1, %s595_s28  ;;  %p599_p9 = scmp.lt.u32.totalorder %s595_s28, %s750_s1 }
  0x16   :  { %p601_p10 = pnand %p599_p9, %p596_p8 }
  0x18   :  { %604 = shalt.err (!%p601_p10)
}
  0x19   :  { %s605_s6 = scalar_lea.vmem %s673_s15, 6144  ;;  %p610_p12 = scmp.lt.s32.totalorder %s673_s15, %s673_s15 }
  0x1a   :  { %p606_p11 = scmp.ne.s32.totalorder %s673_s15, %s605_s6  ;;  %p611_p13 = scmp.lt.s32.totalorder %s605_s6, %s605_s6 }
  0x1c   :  { %p612_p0 = por %p611_p13, %p610_p12 }
  0x1e   :  { %p613_p1 = pnand %p612_p0, %p606_p11 }
  0x20   :  { %616 = shalt.err (!%p613_p1)
}
  0x21   :  { %s647_s0 = smov 128   ;;  %s648_s7 = smov 8  }
  0x22   :  { %32 = dma.hbm_to_vmem [thread:$0]  %s750_s1, 6144, %s673_s15, [#allocation6], %s647_s0, %s647_s0, %s648_s7  }
  0x23   :  { %639 = dma.done.wait [#allocation3], 128  }
  0x24   :  { %640 = vsyncadd [#allocation3], 4294967168 }
  0x25   :  { %641 = dma.done.wait [#allocation6], 6144  }
  0x26   :  { %642 = vsyncadd [#allocation6], 4294961152  ;;  %v649_v0 = vmov 0.0|0.0   ;;  %vm650_vm0 = vmmov 0   ;;  %v651_v1 = vmov 0.0   ;;  %v43_v2 = vld [vmem:[#allocation5] sm:$0xff] }
  0x27   :  { %491 = vmatprep.subr.bf16.mxu0 %v649_v0  ;;  %418 = vmatprep.mubr.msk.f32.mxu0 %vm650_vm0, %v651_v1  ;;  %v44_v3 = vld [vmem:[#allocation5 + $0x8] sm:$0xff]  ;;  %v45_v4 = vld [vmem:[#allocation5 + $0x10] sm:$0xff]  ;;  %v46_v6 = vld [vmem:[#allocation5 + $0x18] sm:$0xff] }
  0x28   :  { %515 = vmatprep.subr.bf16.mxu1 %v649_v0  ;;  %453 = vmatprep.mubr.msk.f32.mxu1 %vm650_vm0, %v651_v1  ;;  %v492_v5 = vpack.c.bf16 %v44_v3, %v43_v2  ;;  %v495_v7 = vpack.c.bf16 %v46_v6, %v45_v4  ;;  %v47_v8 = vld [vmem:[#allocation5 + $0x20] sm:$0xff]  ;;  %v48_v9 = vld [vmem:[#allocation5 + $0x28] sm:$0xff]  ;;  %v137_v12 = vld [vmem:[#allocation5 + $0x90] sm:$0xff] }
  0x29   :  { %v135_v10 = vld [vmem:[#allocation5 + $0x80] sm:$0xff]  ;;  %v136_v11 = vld [vmem:[#allocation5 + $0x88] sm:$0xff]  ;;  %v138_v13 = vld [vmem:[#allocation5 + $0x98] sm:$0xff]  ;;  %v498_v14 = vpack.c.bf16 %v48_v9, %v47_v8  ;;  %v59_v9 = vlaneseq }
  0x2a   :  { %493 = vmatpush3.bf16.msra.mxu0 %v492_v5  ;;  %v516_v15 = vpack.c.bf16 %v136_v11, %v135_v10  ;;  %v49_v16 = vld [vmem:[#allocation5 + $0x30] sm:$0xff]  ;;  %v50_v17 = vld [vmem:[#allocation5 + $0x38] sm:$0xff]  ;;  %v519_v18 = vpack.c.bf16 %v138_v13, %v137_v12  ;;  %v139_v19 = vld [vmem:[#allocation5 + $0xa0] sm:$0xff] }
  0x2b   :  { %494 = vmatprep.subr.bf16.mxu0 %v649_v0  ;;  %v140_v20 = vld [vmem:[#allocation5 + $0xa8] sm:$0xff]  ;;  %v501_v21 = vpack.c.bf16 %v50_v17, %v49_v16  ;;  %v51_v22 = vld [vmem:[#allocation5 + $0x40] sm:$0xff]  ;;  %v141_v25 = vld [vmem:[#allocation5 + $0xb0] sm:$0xff]  ;;  %v60_v10 = vshrl.u32 %v59_v9, 7 }
  0x2c   :  { %517 = vmatpush3.bf16.msra.mxu1 %v516_v15  ;;  %v52_v23 = vld [vmem:[#allocation5 + $0x48] sm:$0xff]  ;;  %v522_v24 = vpack.c.bf16 %v140_v20, %v139_v19  ;;  %v142_v26 = vld [vmem:[#allocation5 + $0xb8] sm:$0xff]  ;;  %v53_v28 = vld [vmem:[#allocation5 + $0x50] sm:$0xff] }
  0x2d   :  { %518 = vmatprep.subr.bf16.mxu1 %v649_v0  ;;  %v504_v27 = vpack.c.bf16 %v52_v23, %v51_v22  ;;  %v54_v29 = vld [vmem:[#allocation5 + $0x58] sm:$0xff]  ;;  %v525_v30 = vpack.c.bf16 %v142_v26, %v141_v25  ;;  %v143_v31 = vld [vmem:[#allocation5 + $0xc0] sm:$0xff]  ;;  %v144_v32 = vld [vmem:[#allocation5 + $0xc8] sm:$0xff]  ;;  %v61_v11 = vsub.s32 0, %v60_v10  ;;  %v245_v26 = vsub.s32 2, %v60_v10 }
  0x2e   :  { %496 = vmatpush3.bf16.msra.mxu0 %v495_v7  ;;  %v507_v33 = vpack.c.bf16 %v54_v29, %v53_v28  ;;  %v55_v34 = vld [vmem:[#allocation5 + $0x60] sm:$0xff]  ;;  %v56_v35 = vld [vmem:[#allocation5 + $0x68] sm:$0xff]  ;;  %v528_v36 = vpack.c.bf16 %v144_v32, %v143_v31  ;;  %v145_v37 = vld [vmem:[#allocation5 + $0xd0] sm:$0xff] }
  0x2f   :  { %497 = vmatprep.subr.bf16.mxu0 %v649_v0  ;;  %v146_v38 = vld [vmem:[#allocation5 + $0xd8] sm:$0xff]  ;;  %v510_v39 = vpack.c.bf16 %v56_v35, %v55_v34  ;;  %v57_v40 = vld [vmem:[#allocation5 + $0x70] sm:$0xff]  ;;  %v147_v43 = vld [vmem:[#allocation5 + $0xe0] sm:$0xff] }
  0x30   :  { %520 = vmatpush3.bf16.msra.mxu1 %v519_v18  ;;  %v58_v41 = vld [vmem:[#allocation5 + $0x78] sm:$0xff]  ;;  %v531_v42 = vpack.c.bf16 %v146_v38, %v145_v37  ;;  %v148_v44 = vld [vmem:[#allocation5 + $0xe8] sm:$0xff]  ;;  %v149_v48 = vld [vmem:[#allocation5 + $0xf0] sm:$0xff] }
  0x31   :  { %521 = vmatprep.subr.bf16.mxu1 %v649_v0  ;;  %v513_v45 = vpack.c.bf16 %v58_v41, %v57_v40  ;;  %v534_v46 = vpack.c.bf16 %v148_v44, %v147_v43  ;;  %v41_v47 = vld [vmem:[#allocation2] sm:$0xff]  ;;  %v227_v51 = vld [vmem:[#allocation5 + $0x100] sm:$0xff]  ;;  %v228_v52 = vld [vmem:[#allocation5 + $0x108] sm:$0xff] }
  0x32   :  { %499 = vmatpush3.bf16.msra.mxu0 %v498_v14  ;;  %v150_v49 = vld [vmem:[#allocation5 + $0xf8] sm:$0xff]  ;;  %v229_v53 = vld [vmem:[#allocation5 + $0x110] sm:$0xff]  ;;  %v540_v54 = vpack.c.bf16 %v228_v52, %v227_v51  ;;  %v231_v57 = vld [vmem:[#allocation5 + $0x120] sm:$0xff] }
  0x33   :  { %500 = vmatprep.subr.bf16.mxu0 %v649_v0  ;;  %v537_v50 = vpack.c.bf16 %v150_v49, %v149_v48  ;;  %v230_v55 = vld [vmem:[#allocation5 + $0x118] sm:$0xff]  ;;  %v232_v58 = vld [vmem:[#allocation5 + $0x128] sm:$0xff]  ;;  %v233_v60 = vld [vmem:[#allocation5 + $0x130] sm:$0xff] }
  0x34   :  { %523 = vmatpush3.bf16.msra.mxu1 %v522_v24  ;;  %v543_v56 = vpack.c.bf16 %v230_v55, %v229_v53  ;;  %v546_v59 = vpack.c.bf16 %v232_v58, %v231_v57  ;;  %v234_v61 = vld [vmem:[#allocation5 + $0x138] sm:$0xff]  ;;  %v235_v63 = vld [vmem:[#allocation5 + $0x140] sm:$0xff]  ;;  %v237_v3 = vld [vmem:[#allocation5 + $0x150] sm:$0xff] }
  0x35   :  { %524 = vmatprep.subr.bf16.mxu1 %v649_v0  ;;  %v549_v62 = vpack.c.bf16 %v234_v61, %v233_v60  ;;  %v238_v4 = vld [vmem:[#allocation5 + $0x158] sm:$0xff]  ;;  %v239_v6 = vld [vmem:[#allocation5 + $0x160] sm:$0xff]  ;;  %v240_v7 = vld [vmem:[#allocation5 + $0x168] sm:$0xff] }
  0x36   :  { %502 = vmatpush3.bf16.msra.mxu0 %v501_v21  ;;  %v555_v5 = vpack.c.bf16 %v238_v4, %v237_v3  ;;  %v558_v8 = vpack.c.bf16 %v240_v7, %v239_v6  ;;  %v42_v12 = vld [vmem:[%s751_s2] sm:$0x7]  ;;  %v241_v18 = vld [vmem:[#allocation5 + $0x170] sm:$0xff]  ;;  %v153_v21 = vsub.s32 1, %v60_v10  ;;  %s652_s2 = smov [#allocation7]  }
  0x37   :  { %503 = vmatprep.subr.bf16.mxu0 %v649_v0  ;;  %v62_v13 = vrot.slane %v42_v12, %v61_v11  ;;  %v242_v19 = vld [vmem:[#allocation5 + $0x178] sm:$0xff]  ;;  %s325_s11 = sshll.u32 %s652_s2, 4  ;;  %s326_s11 = int_to_ptr.vmem [resolvable:$true] %s325_s11 }
  0x38   :  { %526 = vmatpush3.bf16.msra.mxu1 %v525_v30  ;;  %v561_v20 = vpack.c.bf16 %v242_v19, %v241_v18  ;;  %v154_v22 = vrot.slane %v42_v12, %v153_v21  ;;  %s617_s12 = scalar_lea.vmem %s326_s11, 128  ;;  %p622_p3 = scmp.lt.s32.totalorder %s326_s11, %s326_s11 }
  0x39   :  { %527 = vmatprep.subr.bf16.mxu1 %v649_v0  ;;  %p618_p2 = scmp.ne.s32.totalorder %s326_s11, %s617_s12  ;;  %p623_p4 = scmp.lt.s32.totalorder %s617_s12, %s617_s12 }
  0x3a   :  { %505 = vmatpush3.bf16.msra.mxu0 %v504_v27  ;;  %v246_v27 = vrot.slane %v42_v12, %v245_v26 }
  0x3b   :  { %506 = vmatprep.subr.bf16.mxu0 %v649_v0  ;;  %p624_p5 = por %p623_p4, %p622_p3 }
  0x3c   :  { %529 = vmatpush3.bf16.msra.mxu1 %v528_v36 }
  0x3d   :  { %530 = vmatprep.subr.bf16.mxu1 %v649_v0  ;;  %p625_p6 = pnand %p624_p5, %p618_p2 }
  0x3e   :  { %508 = vmatpush3.bf16.msra.mxu0 %v507_v33 }
  0x3f   :  { %509 = vmatprep.subr.bf16.mxu0 %v649_v0 }
  0x40   :  { %532 = vmatpush3.bf16.msra.mxu1 %v531_v42 }
  0x41   :  { %533 = vmatprep.subr.bf16.mxu1 %v649_v0 }
  0x42   :  { %511 = vmatpush3.bf16.msra.mxu0 %v510_v39 }
  0x43   :  { %512 = vmatprep.subr.bf16.mxu0 %v649_v0 }
  0x44   :  { %535 = vmatpush3.bf16.msra.mxu1 %v534_v46 }
  0x45   :  { %536 = vmatprep.subr.bf16.mxu1 %v649_v0 }
  0x46   :  { %514 = vmatpush3.bf16.msra.mxu0 %v513_v45 }
  0x47   :  { %539 = vmatprep.subr.bf16.mxu0 %v649_v0 }
  0x48   :  { %538 = vmatpush3.bf16.msra.mxu1 %v537_v50 }
  0x49   :  { %419 = vmatmul.mubr.f32.vlgmr.msra.gmra.mrb[0].mxu0 %v41_v47 }
  0x4a   :  { %488 = vmatprep.mubr.msk.f32.mxu0 %vm650_vm0, %v651_v1  ;;  %541 = vmatpush3.bf16.msra.mxu0 %v540_v54  ;;  %v236_v1 = vld [vmem:[#allocation5 + $0x148] sm:$0xff] }
  0x4b   :  { %542 = vmatprep.subr.bf16.mxu0 %v649_v0  ;;  %v552_v2 = vpack.c.bf16 %v236_v1, %v235_v63 }
  0x4e   :  { %544 = vmatpush3.bf16.msra.mxu0 %v543_v56 }
  0x4f   :  { %545 = vmatprep.subr.bf16.mxu0 %v649_v0 }
  0x52   :  { %547 = vmatpush3.bf16.msra.mxu0 %v546_v59 }
  0x53   :  { %548 = vmatprep.subr.bf16.mxu0 %v649_v0 }
  0x56   :  { %550 = vmatpush3.bf16.msra.mxu0 %v549_v62 }
  0x57   :  { %551 = vmatprep.subr.bf16.mxu0 %v649_v0 }
  0x5a   :  { %553 = vmatpush3.bf16.msra.mxu0 %v552_v2 }
  0x5b   :  { %554 = vmatprep.subr.bf16.mxu0 %v649_v0 }
  0x5e   :  { %556 = vmatpush3.bf16.msra.mxu0 %v555_v5 }
  0x5f   :  { %557 = vmatprep.subr.bf16.mxu0 %v649_v0 }
  0x62   :  { %559 = vmatpush3.bf16.msra.mxu0 %v558_v8 }
  0x63   :  { %560 = vmatprep.subr.bf16.mxu0 %v649_v0 }
  0x66   :  { %562 = vmatpush3.bf16.msra.mxu0 %v561_v20 }
 0x11c   :  { %v129_v14 = vpop.f32.mrb[0].mxu0 }
 0x11d   :  { %v130_v15 = vadd.f32 %v129_v14, %v62_v13  ;;  %v420_v16 = vpop.f32.mrb[1].mxu0 }
 0x11f   :  { %v133_v17 = vmax.f32 %v130_v15, 0.0 }
 0x121   :  { %454 = vmatmul.mubr.f32.vlgmr.msra.gmra.mrb[0].mxu1 %v133_v17 }
 0x1f4   :  { %v221_v0 = vpop.f32.mrb[0].mxu1 }
 0x1f5   :  { %v222_v23 = vadd.f32 %v221_v0, %v154_v22  ;;  %v455_v24 = vpop.f32.mrb[1].mxu1 }
 0x1f7   :  { %v225_v25 = vmax.f32 %v222_v23, 0.0 }
 0x1f9   :  { %489 = vmatmul.mubr.f32.vlgmr.msra.gmra.mrb[2].mxu0 %v225_v25 }
 0x2cc   :  { %v313_v28 = vpop.f32.mrb[2].mxu0 }
 0x2cd   :  { %v314_v29 = vadd.f32 %v313_v28, %v246_v27  ;;  %v490_v30 = vpop.f32.mrb[3].mxu0 }
 0x2cf   :  { %571 = vtanh.f32 %v314_v29 }
 0x2d9   :  { %v572_v31 = vpop.eup %571 }
 0x2da   :  { %318 = vst [vmem:[#allocation7] sm:$0xff] %v572_v31 }
 0x2db   :  { %628 = shalt.err (!%p625_p6)
}
 0x2dc   :  { %s629_s15 = scalar_lea.hbm %s752_s3, 128 }
 0x2dd   :  { %p630_p7 = scmp.ne.s32.totalorder %s752_s3, %s629_s15  ;;  %p633_p8 = scmp.lt.u32.totalorder %s629_s15, %s752_s3 }
 0x2df   :  { %p635_p9 = pnand %p633_p8, %p630_p7 }
 0x2e1   :  { %638 = shalt.err (!%p635_p9)
}
 0x2e2   :  { %328 = dma.vmem_to_hbm [thread:$0]  %s326_s11, 128, %s752_s3, [#allocation4]  }
 0x2e3   :  { %643 = dma.done.wait [#allocation4], 128  }
 0x2e4   :  { %644 = vsyncadd [#allocation4], 4294967168 }
 0x2e5   :  { %332 = vsyncpa [#allocation3], 1 }
 0x2e6   :  { %333 = vsyncpa [#allocation6], 1 }
 0x2e7   :  { %334 = vsyncpa [#allocation4], 1 }

</bundles_post_ra>
